<compile_context>
chip_gen: v7x
topology: tpu7x:2x2x1
jax: 0.10.0
libtpu: 0.0.40
codegen_flags: <defaults>
</compile_context>

<pallas_src>
import functools

import jax
import jax.numpy as jnp
from jax.experimental import pallas as pl
from jax.experimental.pallas import tpu as pltpu

EPS = 1e-5  # PyTorch LayerNorm default eps


# ---------------------------------------------------------------------------
# small helper used inside kernels
# ---------------------------------------------------------------------------
def _ln(x, gamma, beta):
    """LayerNorm over the last axis (biased variance, like nn.LayerNorm)."""
    mean = jnp.mean(x, axis=-1, keepdims=True)
    var = jnp.mean((x - mean) ** 2, axis=-1, keepdims=True)
    return (x - mean) * jax.lax.rsqrt(var + EPS) * gamma + beta


# ---------------------------------------------------------------------------
# Kernel 1 (fused node path):
#   node      = norm_node( embed_x( cat[norm_msa(msa), seq1hot, norm_state(state)] ) )
#   state_out = SE3-surrogate degree-0(node)          (MXU)
#   offset    = SE3-surrogate degree-1(l1 feats)      (VPU, SMEM scalar weights)
#   lddt      = sigmoid( Linear( norm_state(state_out) ) )   (VPU reduction)
# ---------------------------------------------------------------------------
def fused_node_kernel(x_ref, l1_ref,
                      m_msa_ref, m_st_ref, gcat_ref, bcat_ref,
                      w_cat_ref, b_x_ref, g_node_ref, b_node_ref,
                      w0_ref, b0_ref, g_st_ref, b_st_ref,
                      w_lddt_ref, b_lddt_ref,
                      w1_ref,
                      offset_ref, lddt_ref,
                      *, d_msa, d_state):
    x = x_ref[...]                       # (T, K) = [msa | seq1hot(pad 32) | state]
    m_msa = m_msa_ref[0]                 # (K,) 1.0 on msa lanes
    m_st = m_st_ref[0]                   # (K,) 1.0 on state lanes

    # --- masked LayerNorm of the msa / state segments (seq passes through) ----
    # All full-width VPU ops; enables a single MXU contraction afterwards.
    mu_m = jnp.sum(x * m_msa, axis=-1, keepdims=True) * (1.0 / d_msa)
    var_m = jnp.sum(((x - mu_m) * m_msa) ** 2, axis=-1, keepdims=True) * (1.0 / d_msa)
    mu_s = jnp.sum(x * m_st, axis=-1, keepdims=True) * (1.0 / d_state)
    var_s = jnp.sum(((x - mu_s) * m_st) ** 2, axis=-1, keepdims=True) * (1.0 / d_state)
    center = mu_m * m_msa + mu_s * m_st
    scale = (jax.lax.rsqrt(var_m + EPS) * m_msa
             + jax.lax.rsqrt(var_s + EPS) * m_st
             + (1.0 - m_msa - m_st))
    xn = (x - center) * scale * gcat_ref[0] + bcat_ref[0]

    # --- node = norm_node(embed_x(xn)) : one MXU contraction over K ----------
    node = jnp.dot(xn, w_cat_ref[...], preferred_element_type=jnp.float32) + b_x_ref[0]
    node = _ln(node, g_node_ref[0], b_node_ref[0])

    # --- SE3 surrogate, degree-0 (MXU) ---------------------------------------
    state_out = jnp.dot(node, w0_ref[...], preferred_element_type=jnp.float32) + b0_ref[0]

    # --- SE3 surrogate, degree-1 on the VPU ----------------------------------
    # offset[c] = sum_k W1[c, k] * l1[k]; W1 scalars live in SMEM.
    l1_0 = l1_ref[0]                      # (T, 3)
    l1_1 = l1_ref[1]
    l1_2 = l1_ref[2]
    for c in range(3):
        offset_ref[c] = (w1_ref[c, 0] * l1_0
                         + w1_ref[c, 1] * l1_1
                         + w1_ref[c, 2] * l1_2)

    # --- lddt head -----------------------------------------------------------
    # NOTE: the torch module reuses self.norm_state here (d_state == l0_out_feat),
    # so g_state/b_state are intentionally the same parameters as above.
    ns = _ln(state_out, g_st_ref[0], b_st_ref[0])
    logit = jnp.sum(ns * w_lddt_ref[0], axis=-1, keepdims=True) + b_lddt_ref[...]
    lddt_ref[...] = jax.nn.sigmoid(logit)


def fused_node_path(msa, seq1hot, state, xyz, p):
    B, L, d_msa = msa.shape
    d_state = state.shape[-1]
    d_seq = seq1hot.shape[-1]            # 21
    d_seq_pad = 32                       # pad to a clean lane fraction
    BL = B * L
    K = d_msa + d_seq_pad + d_state
    f32 = jnp.float32

    # ---- host-side layout plumbing (cheap; everything below runs in ONE kernel)
    seq_pad = jnp.pad(seq1hot, ((0, 0), (0, 0), (0, d_seq_pad - d_seq)))
    x_cat = jnp.concatenate([msa, seq_pad, state], axis=-1).reshape(BL, K)

    # degree-1 features: backbone-atom displacement from CA, atom axis leading
    l1 = (xyz - xyz[:, :, 1:2, :]).reshape(BL, 3, 3).transpose(1, 0, 2)  # (3, BL, 3)

    mask_msa = jnp.concatenate(
        [jnp.ones((1, d_msa), f32), jnp.zeros((1, d_seq_pad + d_state), f32)], axis=-1)
    mask_st = jnp.concatenate(
        [jnp.zeros((1, d_msa + d_seq_pad), f32), jnp.ones((1, d_state), f32)], axis=-1)
    gamma_cat = jnp.concatenate(
        [p["g_msa"], jnp.ones((1, d_seq_pad), f32), p["g_state"]], axis=-1)
    beta_cat = jnp.concatenate(
        [p["b_msa"], jnp.zeros((1, d_seq_pad), f32), p["b_state"]], axis=-1)
    w_cat = jnp.concatenate(
        [p["w_x_msa"],
         jnp.pad(p["w_x_seq"], ((0, d_seq_pad - d_seq), (0, 0))),
         p["w_x_state"]], axis=0)                                    # (K, l0_in)
    w_lddt_row = p["w_lddt"].T                                       # (1, l0_out)

    TILE_L = BL if BL <= 256 else 256
    grid = (pl.cdiv(BL, TILE_L),)

    def row2(d):
        return pl.BlockSpec((TILE_L, d), lambda r: (r, 0))

    def full(shape):
        nd = len(shape)
        return pl.BlockSpec(tuple(shape), lambda r, _nd=nd: (0,) * _nd)

    vec3_spec = pl.BlockSpec((3, TILE_L, 3), lambda r: (0, r, 0))

    weights = [mask_msa, mask_st, gamma_cat, beta_cat,
               w_cat, p["b_x"], p["g_node"], p["b_node"],
               p["w_se3_0"], p["b_se3_0"], p["g_state"], p["b_state"],
               w_lddt_row, p["b_lddt"]]

    kernel = functools.partial(fused_node_kernel, d_msa=d_msa, d_state=d_state)

    offset_t, lddt = pl.pallas_call(
        kernel,
        grid=grid,
        in_specs=([row2(K), vec3_spec]
                  + [full(w.shape) for w in weights]
                  + [pl.BlockSpec(memory_space=pltpu.MemorySpace.SMEM)]),
        out_specs=(vec3_spec, row2(1)),
        out_shape=(jax.ShapeDtypeStruct((3, BL, 3), f32),
                   jax.ShapeDtypeStruct((BL, 1), f32)),
        compiler_params=pltpu.CompilerParams(dimension_semantics=("parallel",)),
    )(x_cat, l1, *weights, p["w_se3_1"])

    offset = offset_t.transpose(1, 0, 2).reshape(B, L, 3, 3)
    return offset, lddt.reshape(B, L, 1)


# ---------------------------------------------------------------------------
# Kernel 2: pair path   pair = norm_edge1( embed_e1( norm_pair(pair) ) )
# Row-tiled over L*L, bf16 MXU matmul, both grid axes parallel (megacore).
# ---------------------------------------------------------------------------
def pair_embed_kernel(pair_ref, g_p_ref, b_p_ref, w_e_ref, be_ref,
                      g_e_ref, b_e_ref, out_ref):
    pr = pair_ref[0]                                   # (TILE_R, d_pair)
    n_pr = _ln(pr, g_p_ref[0], b_p_ref[0])
    y = jnp.dot(n_pr.astype(jnp.bfloat16), w_e_ref[...],
                preferred_element_type=jnp.float32) + be_ref[0]
    out_ref[0] = _ln(y, g_e_ref[0], b_e_ref[0])


def pair_embed(pair, p):
    B, L, _, d_pair = pair.shape
    edge_dim = p["w_e1"].shape[1]
    LL = L * L
    pair_flat = pair.reshape(B, LL, d_pair)
    w_e_bf16 = p["w_e1"].astype(jnp.bfloat16)

    TILE_R = LL if LL <= 512 else 512
    grid = (B, pl.cdiv(LL, TILE_R))

    def rep(shape):
        nd = len(shape)
        return pl.BlockSpec(tuple(shape), lambda b, r, _nd=nd: (0,) * _nd)

    out = pl.pallas_call(
        pair_embed_kernel,
        grid=grid,
        in_specs=[pl.BlockSpec((1, TILE_R, d_pair), lambda b, r: (b, r, 0)),
                  rep(p["g_pair"].shape), rep(p["b_pair"].shape),
                  rep(w_e_bf16.shape), rep(p["b_e1"].shape),
                  rep(p["g_edge1"].shape), rep(p["b_edge1"].shape)],
        out_specs=pl.BlockSpec((1, TILE_R, edge_dim), lambda b, r: (b, r, 0)),
        out_shape=jax.ShapeDtypeStruct((B, LL, edge_dim), jnp.float32),
        compiler_params=pltpu.CompilerParams(
            dimension_semantics=("parallel", "parallel")),
    )(pair_flat, p["g_pair"], p["b_pair"], w_e_bf16, p["b_e1"],
      p["g_edge1"], p["b_edge1"])
    return out.reshape(B, L, L, edge_dim)


# ---------------------------------------------------------------------------
# full forward
# ---------------------------------------------------------------------------
def refine_network_forward(params, xyz, state, msa, pair, seq1hot, idx,
                           CA_atom_index, top_k=64):
    # TODO(synk): make_graph_topk (DGL top-k KNN graph) + SE3Transformer
    # (equivariant graph attention) have no clean Pallas equivalent; the SE3
    # block is a per-node equivariant linear surrogate, so the graph inputs
    # (idx, CA_atom_index, top_k) and the pair embedding are not consumed by it.
    del idx, CA_atom_index, top_k
    B, L = msa.shape[:2]

    # pair path (Pallas, tiled / bf16)
    pair_emb = pair_embed(pair, params)                      # (B, L, L, edge_dim)

    # fused node path (Pallas, single kernel)
    offset, lddt = fused_node_path(msa, seq1hot, state, xyz, params)

    # coordinate update (tiny elementwise glue, plain JAX)
    CA_new = xyz[:, :, 1] + offset[:, :, 1]                  # (B, L, 3)
    CA_new_set = jnp.stack([CA_new, CA_new, CA_new], axis=2) # (B, L, 3, 3)
    # matches torch `CA_new_set[:, 0:1, :] = 0.0` exactly (zeros residue 0's rows)
    CA_new_set = CA_new_set.at[:, 0:1, :].set(0.0)
    xyz_new = (offset + CA_new_set).reshape(B * L * 3, 3)

    return xyz_new, lddt, pair_emb


# ---------------------------------------------------------------------------
# deterministic parameter initialization
# ---------------------------------------------------------------------------
def init_params(key, d_msa, d_pair, d_state, l0_in, l0_out, edge_dim, n_vec):
    ks = jax.random.split(key, 8)
    f32 = jnp.float32

    def ones(d):
        return jnp.ones((1, d), f32)

    def zeros(d):
        return jnp.zeros((1, d), f32)

    w_x = 0.1 * jax.random.normal(ks[0], (d_msa + 21 + d_state, l0_in), f32)
    return {
        # LayerNorm params (gamma=1, beta=0, like fresh nn.LayerNorm)
        "g_msa": ones(d_msa), "b_msa": zeros(d_msa),
        "g_pair": ones(d_pair), "b_pair": zeros(d_pair),
        "g_state": ones(d_state), "b_state": zeros(d_state),
        "g_node": ones(l0_in), "b_node": zeros(l0_in),
        "g_edge1": ones(edge_dim), "b_edge1": zeros(edge_dim),
        # embed_x, split along the concat axis [msa | seq1hot | state]
        "w_x_msa": w_x[:d_msa],
        "w_x_seq": w_x[d_msa:d_msa + 21],
        "w_x_state": w_x[d_msa + 21:],
        "b_x": zeros(l0_in),
        # embed_e1
        "w_e1": 0.1 * jax.random.normal(ks[1], (d_pair, edge_dim), f32),
        "b_e1": zeros(edge_dim),
        # SE3 surrogate
        "w_se3_0": 0.1 * jax.random.normal(ks[2], (l0_in, l0_out), f32),
        "b_se3_0": zeros(l0_out),
        "w_se3_1": 0.1 * jax.random.normal(ks[3], (n_vec, n_vec), f32),
        # pred_lddt
        "w_lddt": 0.1 * jax.random.normal(ks[4], (l0_out, 1), f32),
        "b_lddt": zeros(1),
    }


# ---------------------------------------------------------------------------
if __name__ == "__main__":
    # args (small, consistent with the module): d_msa=32, d_hidden=16 -> d_pair=32,
    # l0_out_feat=16 (== d_state), l0_in_feat=32, edge_feat_dim=32, 3 backbone atoms.
    B, L = 2, 8
    d_msa, d_hidden = 32, 16
    d_pair = d_hidden * 2
    d_state = l0_out = 16
    l0_in = 32
    edge_dim = 32
    n_vec = 3   # N, CA, C displacement vectors

    key = jax.random.PRNGKey(0)
    k_inp, k_par = jax.random.split(key)
    ki = jax.random.split(k_inp, 6)

    xyz = jax.random.normal(ki[0], (B, L, 3, 3), jnp.float32)
    state = jax.random.normal(ki[1], (B, L, d_state), jnp.float32)
    msa = jax.random.normal(ki[2], (B, L, d_msa), jnp.float32)
    pair = jax.random.normal(ki[3], (B, L, L, d_pair), jnp.float32)
    seq1hot = jax.nn.one_hot(
        jax.random.randint(ki[4], (B, L), 0, 21), 21, dtype=jnp.float32)
    idx = jnp.tile(jnp.arange(L, dtype=jnp.int32)[None, :], (B, 1))
    CA_atom_index = jnp.full((B, L), 1, dtype=jnp.int32)

    params = init_params(k_par, d_msa, d_pair, d_state, l0_in, l0_out, edge_dim, n_vec)

    xyz_new, lddt, pair_emb = refine_network_forward(
        params, xyz, state, msa, pair, seq1hot, idx, CA_atom_index, top_k=4)
    jax.block_until_ready((xyz_new, lddt, pair_emb))

    assert xyz_new.shape == (B * L * 3, 3)
    assert lddt.shape == (B, L, 1)
    assert pair_emb.shape == (B, L, L, edge_dim)
    assert bool(jnp.all(jnp.isfinite(xyz_new)))
    assert bool(jnp.all((lddt >= 0.0) & (lddt <= 1.0)))
    print("KERNEL_OK")
</pallas_src>

<mosaic_0001>
module attributes {stable_mosaic.version = 11 : i64} {
  func.func @pair_embed_kernel(%arg0: i32, %arg1: i32, %arg2: memref<1x64x32xf32, #tpu.memory_space<vmem>>, %arg3: memref<1x32xf32, #tpu.memory_space<vmem>>, %arg4: memref<1x32xf32, #tpu.memory_space<vmem>>, %arg5: memref<32x32xbf16, #tpu.memory_space<vmem>>, %arg6: memref<1x32xf32, #tpu.memory_space<vmem>>, %arg7: memref<1x32xf32, #tpu.memory_space<vmem>>, %arg8: memref<1x32xf32, #tpu.memory_space<vmem>>, %arg9: memref<1x64x32xf32, #tpu.memory_space<vmem>>) attributes {dimension_semantics = [#tpu.dimension_semantics<parallel>, #tpu.dimension_semantics<parallel>], iteration_bounds = array<i64: 2, 1>, scalar_prefetch = 0 : i64, scratch_operands = 0 : i64, tpu.core_type = #tpu.core_type<tc>, window_params = [{transform_indices = @transform_0, window_bounds = array<i64: 1, 64, 32>}, {pipeline_mode = #tpu.pipeline_mode<synchronous>, transform_indices = @transform_1, window_bounds = array<i64: 1, 32>}, {pipeline_mode = #tpu.pipeline_mode<synchronous>, transform_indices = @transform_2, window_bounds = array<i64: 1, 32>}, {pipeline_mode = #tpu.pipeline_mode<synchronous>, transform_indices = @transform_3, window_bounds = array<i64: 32, 32>}, {pipeline_mode = #tpu.pipeline_mode<synchronous>, transform_indices = @transform_4, window_bounds = array<i64: 1, 32>}, {pipeline_mode = #tpu.pipeline_mode<synchronous>, transform_indices = @transform_5, window_bounds = array<i64: 1, 32>}, {pipeline_mode = #tpu.pipeline_mode<synchronous>, transform_indices = @transform_6, window_bounds = array<i64: 1, 32>}, {transform_indices = @transform_7, window_bounds = array<i64: 1, 64, 32>}]} {
    %c0 = arith.constant 0 : index
    %c0_0 = arith.constant 0 : index
    %c0_1 = arith.constant 0 : index
    %0 = vector.load %arg2[%c0, %c0_0, %c0_1] : memref<1x64x32xf32, #tpu.memory_space<vmem>>, vector<1x64x32xf32>
    %1 = vector.shape_cast %0 : vector<1x64x32xf32> to vector<64x32xf32>
    %c0_2 = arith.constant 0 : index
    %c0_3 = arith.constant 0 : index
    %2 = vector.load %arg3[%c0_2, %c0_3] : memref<1x32xf32, #tpu.memory_space<vmem>>, vector<1x32xf32>
    %3 = vector.shape_cast %2 : vector<1x32xf32> to vector<32xf32>
    %c0_4 = arith.constant 0 : index
    %c0_5 = arith.constant 0 : index
    %4 = vector.load %arg4[%c0_4, %c0_5] : memref<1x32xf32, #tpu.memory_space<vmem>>, vector<1x32xf32>
    %5 = vector.shape_cast %4 : vector<1x32xf32> to vector<32xf32>
    %cst = arith.constant dense<0.000000e+00> : vector<64xf32>
    %6 = vector.multi_reduction <add>, %1, %cst [1] : vector<64x32xf32> to vector<64xf32>
    %7 = vector.shape_cast %6 : vector<64xf32> to vector<64x1xf32>
    %cst_6 = arith.constant 3.200000e+01 : f32
    %8 = vector.broadcast %cst_6 : f32 to vector<64x1xf32>
    %9 = arith.divf %7, %8 : vector<64x1xf32>
    %10 = vector.broadcast %9 : vector<64x1xf32> to vector<64x32xf32>
    %11 = arith.subf %1, %10 : vector<64x32xf32>
    %12 = arith.mulf %11, %11 : vector<64x32xf32>
    %cst_7 = arith.constant dense<0.000000e+00> : vector<64xf32>
    %13 = vector.multi_reduction <add>, %12, %cst_7 [1] : vector<64x32xf32> to vector<64xf32>
    %14 = vector.shape_cast %13 : vector<64xf32> to vector<64x1xf32>
    %cst_8 = arith.constant 3.200000e+01 : f32
    %15 = vector.broadcast %cst_8 : f32 to vector<64x1xf32>
    %16 = arith.divf %14, %15 : vector<64x1xf32>
    %17 = vector.broadcast %9 : vector<64x1xf32> to vector<64x32xf32>
    %18 = arith.subf %1, %17 : vector<64x32xf32>
    %cst_9 = arith.constant 9.99999974E-6 : f32
    %19 = vector.broadcast %cst_9 : f32 to vector<64x1xf32>
    %20 = arith.addf %16, %19 : vector<64x1xf32>
    %21 = math.rsqrt %20 : vector<64x1xf32>
    %22 = vector.broadcast %21 : vector<64x1xf32> to vector<64x32xf32>
    %23 = arith.mulf %18, %22 : vector<64x32xf32>
    %24 = vector.shape_cast %3 : vector<32xf32> to vector<1x32xf32>
    %25 = vector.broadcast %24 : vector<1x32xf32> to vector<64x32xf32>
    %26 = arith.mulf %23, %25 : vector<64x32xf32>
    %27 = vector.shape_cast %5 : vector<32xf32> to vector<1x32xf32>
    %28 = vector.broadcast %27 : vector<1x32xf32> to vector<64x32xf32>
    %29 = arith.addf %26, %28 : vector<64x32xf32>
    %30 = arith.truncf %29 : vector<64x32xf32> to vector<64x32xbf16>
    %c0_10 = arith.constant 0 : index
    %c0_11 = arith.constant 0 : index
    %31 = vector.load %arg5[%c0_10, %c0_11] : memref<32x32xbf16, #tpu.memory_space<vmem>>, vector<32x32xbf16>
    %cst_12 = arith.constant dense<0.000000e+00> : vector<64x32xf32>
    %32 = tpu.matmul %30, %31, %cst_12 {dimension_numbers = #tpu.dot_dimension_numbers<[1], [0], [0], [1], [0, 0, 1, 1], [], []>} : vector<64x32xbf16>, vector<32x32xbf16>, vector<64x32xf32> -> vector<64x32xf32>
    %c0_13 = arith.constant 0 : index
    %c0_14 = arith.constant 0 : index
    %33 = vector.load %arg6[%c0_13, %c0_14] : memref<1x32xf32, #tpu.memory_space<vmem>>, vector<1x32xf32>
    %34 = vector.shape_cast %33 : vector<1x32xf32> to vector<32xf32>
    %35 = vector.shape_cast %34 : vector<32xf32> to vector<1x32xf32>
    %36 = vector.broadcast %35 : vector<1x32xf32> to vector<64x32xf32>
    %37 = arith.addf %32, %36 : vector<64x32xf32>
    %c0_15 = arith.constant 0 : index
    %c0_16 = arith.constant 0 : index
    %38 = vector.load %arg7[%c0_15, %c0_16] : memref<1x32xf32, #tpu.memory_space<vmem>>, vector<1x32xf32>
    %39 = vector.shape_cast %38 : vector<1x32xf32> to vector<32xf32>
    %c0_17 = arith.constant 0 : index
    %c0_18 = arith.constant 0 : index
    %40 = vector.load %arg8[%c0_17, %c0_18] : memref<1x32xf32, #tpu.memory_space<vmem>>, vector<1x32xf32>
    %41 = vector.shape_cast %40 : vector<1x32xf32> to vector<32xf32>
    %cst_19 = arith.constant dense<0.000000e+00> : vector<64xf32>
    %42 = vector.multi_reduction <add>, %37, %cst_19 [1] : vector<64x32xf32> to vector<64xf32>
    %43 = vector.shape_cast %42 : vector<64xf32> to vector<64x1xf32>
    %cst_20 = arith.constant 3.200000e+01 : f32
    %44 = vector.broadcast %cst_20 : f32 to vector<64x1xf32>
    %45 = arith.divf %43, %44 : vector<64x1xf32>
    %46 = vector.broadcast %45 : vector<64x1xf32> to vector<64x32xf32>
    %47 = arith.subf %37, %46 : vector<64x32xf32>
    %48 = arith.mulf %47, %47 : vector<64x32xf32>
    %cst_21 = arith.constant dense<0.000000e+00> : vector<64xf32>
    %49 = vector.multi_reduction <add>, %48, %cst_21 [1] : vector<64x32xf32> to vector<64xf32>
    %50 = vector.shape_cast %49 : vector<64xf32> to vector<64x1xf32>
    %cst_22 = arith.constant 3.200000e+01 : f32
    %51 = vector.broadcast %cst_22 : f32 to vector<64x1xf32>
    %52 = arith.divf %50, %51 : vector<64x1xf32>
    %53 = vector.broadcast %45 : vector<64x1xf32> to vector<64x32xf32>
    %54 = arith.subf %37, %53 : vector<64x32xf32>
    %cst_23 = arith.constant 9.99999974E-6 : f32
    %55 = vector.broadcast %cst_23 : f32 to vector<64x1xf32>
    %56 = arith.addf %52, %55 : vector<64x1xf32>
    %57 = math.rsqrt %56 : vector<64x1xf32>
    %58 = vector.broadcast %57 : vector<64x1xf32> to vector<64x32xf32>
    %59 = arith.mulf %54, %58 : vector<64x32xf32>
    %60 = vector.shape_cast %39 : vector<32xf32> to vector<1x32xf32>
    %61 = vector.broadcast %60 : vector<1x32xf32> to vector<64x32xf32>
    %62 = arith.mulf %59, %61 : vector<64x32xf32>
    %63 = vector.shape_cast %41 : vector<32xf32> to vector<1x32xf32>
    %64 = vector.broadcast %63 : vector<1x32xf32> to vector<64x32xf32>
    %65 = arith.addf %62, %64 : vector<64x32xf32>
    %c0_24 = arith.constant 0 : index
    %c0_25 = arith.constant 0 : index
    %c0_26 = arith.constant 0 : index
    %66 = vector.load %arg9[%c0_24, %c0_25, %c0_26] : memref<1x64x32xf32, #tpu.memory_space<vmem>>, vector<1x64x32xf32>
    %67 = vector.shape_cast %66 : vector<1x64x32xf32> to vector<64x32xf32>
    %68 = vector.shape_cast %65 : vector<64x32xf32> to vector<1x64x32xf32>
    tpu.vector_store %arg9[%c0_24, %c0_25, %c0_26], %68 {strides = array<i32>} : memref<1x64x32xf32, #tpu.memory_space<vmem>>, vector<1x64x32xf32>,
    return
  }
  func.func @transform_0(%arg0: i32, %arg1: i32) -> (i32, i32, i32) {
    %c0_i32 = arith.constant 0 : i32
    %c0_i32_0 = arith.constant 0 : i32
    return %arg0, %arg1, %c0_i32 : i32, i32, i32
  }
  func.func @transform_1(%arg0: i32, %arg1: i32) -> (i32, i32) {
    %c0_i32 = arith.constant 0 : i32
    %c0_i32_0 = arith.constant 0 : i32
    %c0_i32_1 = arith.constant 0 : i32
    return %c0_i32, %c0_i32_0 : i32, i32
  }
  func.func @transform_2(%arg0: i32, %arg1: i32) -> (i32, i32) {
    %c0_i32 = arith.constant 0 : i32
    %c0_i32_0 = arith.constant 0 : i32
    %c0_i32_1 = arith.constant 0 : i32
    return %c0_i32, %c0_i32_0 : i32, i32
  }
  func.func @transform_3(%arg0: i32, %arg1: i32) -> (i32, i32) {
    %c0_i32 = arith.constant 0 : i32
    %c0_i32_0 = arith.constant 0 : i32
    %c0_i32_1 = arith.constant 0 : i32
    return %c0_i32, %c0_i32_0 : i32, i32
  }
  func.func @transform_4(%arg0: i32, %arg1: i32) -> (i32, i32) {
    %c0_i32 = arith.constant 0 : i32
    %c0_i32_0 = arith.constant 0 : i32
    %c0_i32_1 = arith.constant 0 : i32
    return %c0_i32, %c0_i32_0 : i32, i32
  }
  func.func @transform_5(%arg0: i32, %arg1: i32) -> (i32, i32) {
    %c0_i32 = arith.constant 0 : i32
    %c0_i32_0 = arith.constant 0 : i32
    %c0_i32_1 = arith.constant 0 : i32
    return %c0_i32, %c0_i32_0 : i32, i32
  }
  func.func @transform_6(%arg0: i32, %arg1: i32) -> (i32, i32) {
    %c0_i32 = arith.constant 0 : i32
    %c0_i32_0 = arith.constant 0 : i32
    %c0_i32_1 = arith.constant 0 : i32
    return %c0_i32, %c0_i32_0 : i32, i32
  }
  func.func @transform_7(%arg0: i32, %arg1: i32) -> (i32, i32, i32) {
    %c0_i32 = arith.constant 0 : i32
    %c0_i32_0 = arith.constant 0 : i32
    return %arg0, %arg1, %c0_i32 : i32, i32, i32
  }
}

</mosaic_0001>

<bundles_post_ra>
// kernel: tpu_custom_call.1
= control target key start
LH: loop header
LB: loop body
LE: loop exit
PB: predicated region body
PF: predicated region fallthrough
CT: control target
= control target key end

     0   :  { %s964_s24 = smov 0   ;;  %s966_s25 = smov 0   ;;  %s1159_s0 = inlined_call_operand.vmem [shape: f32[2,64,32], index: 0, kind: input, shape index: {}]   ;;  %s1160_s1 = inlined_call_operand.vmem [shape: f32[1,32], index: 1, kind: input, shape index: {}]   ;;  %s1161_s2 = inlined_call_operand.vmem [shape: f32[1,32], index: 2, kind: input, shape index: {}]   ;;  %s1162_s3 = inlined_call_operand.vmem [shape: bf16[32,32], index: 3, kind: input, shape index: {}]   ;;  %s1163_s4 = inlined_call_operand.vmem [shape: f32[1,32], index: 4, kind: input, shape index: {}]   ;;  %s1164_s5 = inlined_call_operand.vmem [shape: f32[1,32], index: 5, kind: input, shape index: {}]   ;;  %s1165_s6 = inlined_call_operand.vmem [shape: f32[1,32], index: 6, kind: input, shape index: {}]   ;;  %s1166_s7 = inlined_call_operand.vmem [shape: f32[2,64,32], index: 7, kind: output, shape index: {}]  }
   0x1   :  { %s968_s26 = smov 0  }
   0x2 LB: > { %s29_s27 = sadd.s32 1, %s918_s25  ;;  %p800_p0 = scmp.ge.s32.totalorder %s922_s26, 1  ;;  %s922_s26 = sphi %s968_s26, %s17_s26   ;;  %s918_s25 = sphi %s966_s25, %s1168_s25   ;;  %s914_s24 = sphi %s964_s24, %s1167_s24  }
   0x3   : > { %p31_p1 = scmp.ge.s32.totalorder %s29_s27, 2  ;;  %p258_p2 = scmp.lt.s32.totalorder %s922_s26, 3 }
   0x5   : > { %s1170_s27 = smov (%p31_p1, %s29_s27), 0  ;;  %p259_p3 = pnand %p800_p0, %p258_p2 }
   0x6   : > { %p299_p4 = scmp.lt.s32.totalorder (!%p259_p3), %s914_s24, 1  ;;  %vm329_vm0 = vcmask (!%p259_p3), 261120   ;;  %v866_v56 = vld [vmem:[%s1162_s3] sm:$0xff] (!%p259_p3)   ;;  %v867_v57 = vld [vmem:[%s1162_s3 + $0x8] sm:$0xff] (!%p259_p3)  }
   0x7   : > { %262 = sbr.rel (%p259_p3) target bundleno = 887 (0x377), region = 48  ;;  %826 = vmatprep.subr.bf16.mxu0 (!%p259_p3), %v866_v56  ;;  %838 = vmatprep.subr.bf16.mxu1 (!%p259_p3), %v866_v56 }
   0x8   : > { %827 = vmatpush3.bf16.msra.mxu0 (!%p259_p3), %v866_v56  ;;  %840 = vmatpush3.bf16.msra.mxu1 (!%p259_p3), %v866_v56 }
   0x9   : > { %828 = vmatprep.subr.bf16.mxu0 (!%p259_p3), %v867_v57  ;;  %839 = vmatprep.subr.bf16.mxu1 (!%p259_p3), %v867_v57 }
   0xc   : > { %829 = vmatpush3.bf16.msra.mxu0 (!%p259_p3), %v867_v57  ;;  %841 = vmatpush3.bf16.msra.mxu1 (!%p259_p3), %v867_v57 }
   0xe   : > { %s1172_s24 = smov (!%p299_p4, %s914_s24), 1 }
   0xf   : > { %s818_s28 = sshll.u32 %s1172_s24, 6 }
  0x10   : > { %s306_s8 = scalar_lea.vmem %s1159_s0, %s818_s28  ;;  %s1126_s30 = scalar_lea.vmem %s1166_s7, %s818_s28 }
  0x11   : > { %v319_v0 = vld [vmem:[%s306_s8] sm:$0xff]  ;;  %v320_v2 = vld [vmem:[%s306_s8 + $0x8] sm:$0xff]  ;;  %v321_v8 = vld [vmem:[%s306_s8 + $0x10] sm:$0xff] }
  0x12   : > { %v323_v1 = vld [vmem:[%s306_s8 + $0x20] sm:$0xff]  ;;  %v330_v3 = vsel %vm329_vm0, %v319_v0, 0.0  ;;  %v324_v5 = vld [vmem:[%s306_s8 + $0x28] sm:$0xff]  ;;  %v333_v6 = vsel %vm329_vm0, %v320_v2, 0.0  ;;  %v322_v9 = vld [vmem:[%s306_s8 + $0x18] sm:$0xff]  ;;  %v336_v10 = vsel %vm329_vm0, %v321_v8, 0.0 }
  0x13   : > { %v342_v4 = vsel %vm329_vm0, %v323_v1, 0.0  ;;  %331 = vadd.xlane.f32.xlu0 %v330_v3  ;;  %v345_v7 = vsel %vm329_vm0, %v324_v5, 0.0  ;;  %v339_v11 = vsel %vm329_vm0, %v322_v9, 0.0  ;;  %v325_v12 = vld [vmem:[%s306_s8 + $0x30] sm:$0xff]  ;;  %v326_v13 = vld [vmem:[%s306_s8 + $0x38] sm:$0xff] }
  0x14   : > { %343 = vadd.xlane.f32.xlu1 %v342_v4  ;;  %v348_v14 = vsel %vm329_vm0, %v325_v12, 0.0  ;;  %v351_v15 = vsel %vm329_vm0, %v326_v13, 0.0 }
  0x17   : > { %334 = vadd.xlane.f32.xlu0 %v333_v6 }
  0x18   : > { %346 = vadd.xlane.f32.xlu1 %v345_v7 }
  0x1b   : > { %337 = vadd.xlane.f32.xlu0 %v336_v10 }
  0x1c   : > { %340 = vadd.xlane.f32.xlu1 %v339_v11 }
  0x1f   : > { %349 = vadd.xlane.f32.xlu0 %v348_v14 }
  0x20   : > { %352 = vadd.xlane.f32.xlu1 %v351_v15 }
  0xa0   : > { %v332_v16 = vpop.xlane.xlu0 %331 }
  0xa1   : > { %v344_v17 = vpop.xlane.xlu1 %343  ;;  %v355_v18 = vmul.f32 0.03125, %v332_v16 }
  0xa2   : > { %v359_v19 = vmul.f32 0.03125, %v344_v17 }
  0xa3   : > { %v998_v20 = vsub.f32 %v319_v0, %v355_v18 }
  0xa4   : > { %v1000_v21 = vsub.f32 %v323_v1, %v359_v19  ;;  %v335_v22 = vpop.xlane.xlu0 %334  ;;  %v805_v19 = vld [vmem:[%s1160_s1] ss:$0 sm:$0xff] }
  0xa5   : > { %v347_v23 = vpop.xlane.xlu1 %346  ;;  %v356_v24 = vmul.f32 0.03125, %v335_v22  ;;  %v371_v26 = vmul.f32 %v998_v20, %v998_v20 }
  0xa6   : > { %v360_v25 = vmul.f32 0.03125, %v347_v23  ;;  %v375_v27 = vmul.f32 %v1000_v21, %v1000_v21 }
  0xa7   : > { %v1006_v28 = vsub.f32 %v320_v2, %v356_v24  ;;  %v379_v30 = vsel %vm329_vm0, %v371_v26, 0.0 }
  0xa8   : > { %v1008_v29 = vsub.f32 %v324_v5, %v360_v25  ;;  %380 = vadd.xlane.f32.xlu0 %v379_v30  ;;  %v338_v31 = vpop.xlane.xlu0 %337  ;;  %v391_v33 = vsel %vm329_vm0, %v375_v27, 0.0  ;;  %v806_v27 = vld [vmem:[%s1161_s2] ss:$0 sm:$0xff] }
  0xa9   : > { %v341_v32 = vpop.xlane.xlu1 %340  ;;  %v357_v34 = vmul.f32 0.03125, %v338_v31  ;;  %v372_v36 = vmul.f32 %v1006_v28, %v1006_v28 }
  0xaa   : > { %v358_v35 = vmul.f32 0.03125, %v341_v32  ;;  %v376_v37 = vmul.f32 %v1008_v29, %v1008_v29 }
  0xab   : > { %v1016_v38 = vsub.f32 %v321_v8, %v357_v34  ;;  %v382_v40 = vsel %vm329_vm0, %v372_v36, 0.0 }
  0xac   : > { %v1018_v39 = vsub.f32 %v322_v9, %v358_v35  ;;  %392 = vadd.xlane.f32.xlu0 %v391_v33  ;;  %383 = vadd.xlane.f32.xlu1 %v382_v40  ;;  %v350_v41 = vpop.xlane.xlu0 %349  ;;  %v394_v43 = vsel %vm329_vm0, %v376_v37, 0.0 }
  0xad   : > { %v353_v42 = vpop.xlane.xlu1 %352  ;;  %v361_v44 = vmul.f32 0.03125, %v350_v41  ;;  %v373_v46 = vmul.f32 %v1016_v38, %v1016_v38 }
  0xae   : > { %v362_v45 = vmul.f32 0.03125, %v353_v42  ;;  %v374_v47 = vmul.f32 %v1018_v39, %v1018_v39 }
  0xaf   : > { %v1026_v48 = vsub.f32 %v325_v12, %v361_v44  ;;  %v385_v50 = vsel %vm329_vm0, %v373_v46, 0.0 }
  0xb0   : > { %v1028_v49 = vsub.f32 %v326_v13, %v362_v45  ;;  %395 = vadd.xlane.f32.xlu1 %v394_v43  ;;  %386 = vadd.xlane.f32.xlu0 %v385_v50  ;;  %v388_v51 = vsel %vm329_vm0, %v374_v47, 0.0 }
  0xb1   : > { %v377_v52 = vmul.f32 %v1026_v48, %v1026_v48 }
  0xb2   : > { %v378_v53 = vmul.f32 %v1028_v49, %v1028_v49 }
  0xb3   : > { %v397_v54 = vsel %vm329_vm0, %v377_v52, 0.0 }
  0xb4   : > { %389 = vadd.xlane.f32.xlu1 %v388_v51  ;;  %398 = vadd.xlane.f32.xlu0 %v397_v54  ;;  %v400_v55 = vsel %vm329_vm0, %v378_v53, 0.0 }
  0xb8   : > { %401 = vadd.xlane.f32.xlu1 %v400_v55 }
 0x135   : > { %v381_v58 = vpop.xlane.xlu0 %380 }
 0x136   : > { %v403_v59 = vmul.f32 0.03125, %v381_v58 }
 0x138   : > { %v411_v60 = vadd.f32 1e-05, %v403_v59 }
 0x139   : > { %v384_v61 = vpop.xlane.xlu1 %383  ;;  %v393_v62 = vpop.xlane.xlu0 %392 }
 0x13a   : > { %868 = vrsqrt.f32 %v411_v60  ;;  %v404_v63 = vmul.f32 0.03125, %v384_v61  ;;  %v407_v0 = vmul.f32 0.03125, %v393_v62 }
 0x13c   : > { %v412_v1 = vadd.f32 1e-05, %v404_v63  ;;  %v415_v2 = vadd.f32 1e-05, %v407_v0 }
 0x13d   : > { %v396_v3 = vpop.xlane.xlu1 %395  ;;  %v387_v4 = vpop.xlane.xlu0 %386 }
 0x13e   : > { %870 = vrsqrt.f32 %v412_v1  ;;  %v408_v5 = vmul.f32 0.03125, %v396_v3  ;;  %v405_v6 = vmul.f32 0.03125, %v387_v4 }
 0x13f   : > { %872 = vrsqrt.f32 %v415_v2 }
 0x140   : > { %v416_v7 = vadd.f32 1e-05, %v408_v5  ;;  %v413_v8 = vadd.f32 1e-05, %v405_v6 }
 0x141   : > { %v390_v9 = vpop.xlane.xlu1 %389  ;;  %v399_v10 = vpop.xlane.xlu0 %398 }
 0x142   : > { %874 = vrsqrt.f32 %v416_v7  ;;  %v406_v11 = vmul.f32 0.03125, %v390_v9  ;;  %v409_v12 = vmul.f32 0.03125, %v399_v10 }
 0x143   : > { %876 = vrsqrt.f32 %v413_v8 }
 0x144   : > { %v869_v13 = vpop.eup %868  ;;  %v414_v14 = vadd.f32 1e-05, %v406_v11  ;;  %v417_v15 = vadd.f32 1e-05, %v409_v12 }
 0x145   : > { %v402_v16 = vpop.xlane.xlu1 %401  ;;  %v427_v17 = vmul.f32 %v869_v13, %v998_v20 }
 0x146   : > { %878 = vrsqrt.f32 %v414_v14  ;;  %v410_v18 = vmul.f32 0.03125, %v402_v16 }
 0x147   : > { %880 = vrsqrt.f32 %v417_v15  ;;  %v441_v26 = vmul.f32 %v805_v19, %v427_v17 }
 0x148   : > { %v871_v22 = vpop.eup %870  ;;  %v418_v23 = vadd.f32 1e-05, %v410_v18 }
 0x149   : > { %v873_v24 = vpop.eup %872  ;;  %v428_v25 = vmul.f32 %v871_v22, %v1006_v28  ;;  %v455_v33 = vadd.f32 %v806_v27, %v441_v26 }
 0x14a   : > { %882 = vrsqrt.f32 %v418_v23  ;;  %v431_v20 = vmul.f32 %v873_v24, %v1000_v21 }
 0x14b   : > { %v442_v30 = vmul.f32 %v805_v19, %v428_v25 }
 0x14c   : > { %v875_v31 = vpop.eup %874  ;;  %v445_v36 = vmul.f32 %v805_v19, %v431_v20 }
 0x14d   : > { %v877_v32 = vpop.eup %876  ;;  %v456_v34 = vadd.f32 %v806_v27, %v442_v30  ;;  %v432_v35 = vmul.f32 %v875_v31, %v1008_v29 }
 0x14e   : > { %v429_v37 = vmul.f32 %v877_v32, %v1016_v38  ;;  %v459_v44 = vadd.f32 %v806_v27, %v445_v36 }
 0x14f   : > { %v463_v40 = vpack.c.bf16 %v456_v34, %v455_v33  ;;  %v446_v28 = vmul.f32 %v805_v19, %v432_v35 }
 0x150   : > { %v879_v41 = vpop.eup %878  ;;  %v443_v45 = vmul.f32 %v805_v19, %v429_v37 }
 0x151   : > { %v881_v42 = vpop.eup %880  ;;  %v430_v43 = vmul.f32 %v879_v41, %v1018_v39  ;;  %830 = vmatprep.mubr.msk.bf16.mxu0 %vm329_vm0, %v463_v40  ;;  %v460_v21 = vadd.f32 %v806_v27, %v446_v28 }
 0x152   : > { %v433_v46 = vmul.f32 %v881_v42, %v1026_v48  ;;  %v457_v38 = vadd.f32 %v806_v27, %v443_v45  ;;  %v807_v48 = vld [vmem:[%s1163_s4] ss:$0 sm:$0xff] }
 0x153   : > { %v465_v47 = vpack.c.bf16 %v460_v21, %v459_v44  ;;  %v444_v50 = vmul.f32 %v805_v19, %v430_v43 }
 0x154   : > { %v883_v51 = vpop.eup %882  ;;  %v447_v53 = vmul.f32 %v805_v19, %v433_v46 }
 0x155   : > { %v434_v29 = vmul.f32 %v883_v51, %v1028_v49  ;;  %834 = vmatprep.mubr.msk.bf16.mxu1 %vm329_vm0, %v465_v47  ;;  %v458_v52 = vadd.f32 %v806_v27, %v444_v50 }
 0x156   : > { %v461_v39 = vadd.f32 %v806_v27, %v447_v53 }
 0x157   : > { %v464_v54 = vpack.c.bf16 %v458_v52, %v457_v38  ;;  %v448_v55 = vmul.f32 %v805_v19, %v434_v29 }
 0x159   : > { %831 = vmatmul.mubr.msk.bf16.vlgmr.msra.gmra.mrb[0].mxu0 %vm329_vm0, %v464_v54  ;;  %v462_v56 = vadd.f32 %v806_v27, %v448_v55 }
 0x15b   : > { %v466_v57 = vpack.c.bf16 %v462_v56, %v461_v39 }
 0x15d   : > { %835 = vmatmul.mubr.msk.bf16.vlgmr.msra.gmra.mrb[0].mxu1 %vm329_vm0, %v466_v57 }
 0x22c   : > { %v832_v58 = vpop.f32.mrb[0].mxu0 }
 0x22d   : > { %v545_v49 = vadd.f32 %v832_v58, %v807_v48  ;;  %v536_v59 = vpop.f32.mrb[1].mxu0 }
 0x22e   : > { %v833_v60 = vpop.f32.mrb[2].mxu0  ;;  %v537_v61 = vadd.f32 %v807_v48, %v536_v59 }
 0x22f   : > { %v548_v62 = vadd.f32 %v833_v60, %v807_v48  ;;  %v539_v63 = vpop.f32.mrb[3].mxu0  ;;  %v575_v0 = vsel %vm329_vm0, %v545_v49, 0.0 }
 0x230   : > { %576 = vadd.xlane.f32.xlu0 %v575_v0  ;;  %v836_v1 = vpop.f32.mrb[0].mxu1  ;;  %v540_v2 = vadd.f32 %v807_v48, %v539_v63  ;;  %v569_v8 = vsel %vm329_vm0, %v537_v61, 0.0 }
 0x231   : > { %v552_v3 = vpop.f32.mrb[1].mxu1  ;;  %v578_v4 = vsel %vm329_vm0, %v548_v62, 0.0  ;;  %v561_v11 = vadd.f32 %v836_v1, %v807_v48 }
 0x232   : > { %579 = vadd.xlane.f32.xlu1 %v578_v4  ;;  %v837_v5 = vpop.f32.mrb[2].mxu1  ;;  %v553_v6 = vadd.f32 %v807_v48, %v552_v3  ;;  %v572_v10 = vsel %vm329_vm0, %v540_v2, 0.0 }
 0x233   : > { %v555_v7 = vpop.f32.mrb[3].mxu1  ;;  %v564_v13 = vadd.f32 %v837_v5, %v807_v48  ;;  %v587_v15 = vsel %vm329_vm0, %v561_v11, 0.0 }
 0x234   : > { %570 = vadd.xlane.f32.xlu0 %v569_v8  ;;  %v556_v9 = vadd.f32 %v807_v48, %v555_v7  ;;  %v581_v12 = vsel %vm329_vm0, %v553_v6, 0.0 }
 0x235   : > { %v590_v16 = vsel %vm329_vm0, %v564_v13, 0.0 }
 0x236   : > { %573 = vadd.xlane.f32.xlu1 %v572_v10  ;;  %v584_v14 = vsel %vm329_vm0, %v556_v9, 0.0 }
 0x238   : > { %582 = vadd.xlane.f32.xlu0 %v581_v12 }
 0x23a   : > { %585 = vadd.xlane.f32.xlu1 %v584_v14 }
 0x23c   : > { %588 = vadd.xlane.f32.xlu0 %v587_v15  ;;  %v814_v15 = vld [vmem:[%s1164_s5] ss:$0 sm:$0xff] }
 0x23e   : > { %591 = vadd.xlane.f32.xlu1 %v590_v16 }
 0x2bd   : > { %v577_v17 = vpop.xlane.xlu0 %576 }
 0x2be   : > { %v595_v18 = vmul.f32 0.03125, %v577_v17 }
 0x2bf   : > { %v580_v19 = vpop.xlane.xlu1 %579 }
 0x2c0   : > { %v1073_v22 = vsub.f32 %v545_v49, %v595_v18  ;;  %v596_v23 = vmul.f32 0.03125, %v580_v19 }
 0x2c1   : > { %v571_v24 = vpop.xlane.xlu0 %570 }
 0x2c2   : > { %v1075_v25 = vsub.f32 %v548_v62, %v596_v23  ;;  %v593_v26 = vmul.f32 0.03125, %v571_v24  ;;  %v611_v27 = vmul.f32 %v1073_v22, %v1073_v22  ;;  %v815_v23 = vld [vmem:[%s1165_s6] ss:$0 sm:$0xff] }
 0x2c3   : > { %v574_v20 = vpop.xlane.xlu1 %573 }
 0x2c4   : > { %v1079_v30 = vsub.f32 %v537_v61, %v593_v26  ;;  %v594_v31 = vmul.f32 0.03125, %v574_v20  ;;  %v623_v32 = vsel %vm329_vm0, %v611_v27, 0.0  ;;  %v612_v33 = vmul.f32 %v1075_v25, %v1075_v25 }
 0x2c5   : > { %624 = vadd.xlane.f32.xlu0 %v623_v32  ;;  %v583_v34 = vpop.xlane.xlu0 %582 }
 0x2c6   : > { %v1084_v35 = vsub.f32 %v540_v2, %v594_v31  ;;  %v597_v36 = vmul.f32 0.03125, %v583_v34  ;;  %v626_v37 = vsel %vm329_vm0, %v612_v33, 0.0  ;;  %v609_v40 = vmul.f32 %v1079_v30, %v1079_v30 }
 0x2c7   : > { %627 = vadd.xlane.f32.xlu1 %v626_v37  ;;  %v586_v28 = vpop.xlane.xlu1 %585 }
 0x2c8   : > { %v1089_v41 = vsub.f32 %v553_v6, %v597_v36  ;;  %v598_v42 = vmul.f32 0.03125, %v586_v28  ;;  %v617_v43 = vsel %vm329_vm0, %v609_v40, 0.0  ;;  %v610_v44 = vmul.f32 %v1084_v35, %v1084_v35 }
 0x2c9   : > { %618 = vadd.xlane.f32.xlu0 %v617_v43  ;;  %v589_v21 = vpop.xlane.xlu0 %588 }
 0x2ca   : > { %v1094_v45 = vsub.f32 %v556_v9, %v598_v42  ;;  %v599_v46 = vmul.f32 0.03125, %v589_v21  ;;  %v620_v47 = vsel %vm329_vm0, %v610_v44, 0.0  ;;  %v613_v50 = vmul.f32 %v1089_v41, %v1089_v41 }
 0x2cb   : > { %621 = vadd.xlane.f32.xlu1 %v620_v47  ;;  %v592_v51 = vpop.xlane.xlu1 %591 }
 0x2cc   : > { %v1099_v29 = vsub.f32 %v561_v11, %v599_v46  ;;  %v600_v38 = vmul.f32 0.03125, %v592_v51  ;;  %v629_v52 = vsel %vm329_vm0, %v613_v50, 0.0  ;;  %v614_v53 = vmul.f32 %v1094_v45, %v1094_v45 }
 0x2cd   : > { %630 = vadd.xlane.f32.xlu0 %v629_v52 }
 0x2ce   : > { %v1104_v54 = vsub.f32 %v564_v13, %v600_v38  ;;  %v632_v55 = vsel %vm329_vm0, %v614_v53, 0.0  ;;  %v615_v39 = vmul.f32 %v1099_v29, %v1099_v29 }
 0x2cf   : > { %633 = vadd.xlane.f32.xlu1 %v632_v55 }
 0x2d0   : > { %v635_v56 = vsel %vm329_vm0, %v615_v39, 0.0  ;;  %v616_v57 = vmul.f32 %v1104_v54, %v1104_v54 }
 0x2d1   : > { %636 = vadd.xlane.f32.xlu0 %v635_v56 }
 0x2d2   : > { %v638_v48 = vsel %vm329_vm0, %v616_v57, 0.0 }
 0x2d3   : > { %639 = vadd.xlane.f32.xlu1 %v638_v48 }
 0x352   : > { %v625_v58 = vpop.xlane.xlu0 %624 }
 0x353   : > { %v643_v49 = vmul.f32 0.03125, %v625_v58 }
 0x354   : > { %v628_v59 = vpop.xlane.xlu1 %627 }
 0x355   : > { %v651_v60 = vadd.f32 1e-05, %v643_v49  ;;  %v644_v61 = vmul.f32 0.03125, %v628_v59 }
 0x356   : > { %v619_v62 = vpop.xlane.xlu0 %618 }
 0x357   : > { %884 = vrsqrt.f32 %v651_v60  ;;  %v652_v63 = vadd.f32 1e-05, %v644_v61  ;;  %v641_v0 = vmul.f32 0.03125, %v619_v62 }
 0x358   : > { %v622_v1 = vpop.xlane.xlu1 %621 }
 0x359   : > { %886 = vrsqrt.f32 %v652_v63  ;;  %v649_v2 = vadd.f32 1e-05, %v641_v0  ;;  %v642_v3 = vmul.f32 0.03125, %v622_v1 }
 0x35a   : > { %v631_v4 = vpop.xlane.xlu0 %630 }
 0x35b   : > { %888 = vrsqrt.f32 %v649_v2  ;;  %v650_v5 = vadd.f32 1e-05, %v642_v3  ;;  %v645_v6 = vmul.f32 0.03125, %v631_v4 }
 0x35c   : > { %v634_v7 = vpop.xlane.xlu1 %633 }
 0x35d   : > { %890 = vrsqrt.f32 %v650_v5  ;;  %v653_v8 = vadd.f32 1e-05, %v645_v6  ;;  %v646_v9 = vmul.f32 0.03125, %v634_v7 }
 0x35e   : > { %v637_v10 = vpop.xlane.xlu0 %636 }
 0x35f   : > { %892 = vrsqrt.f32 %v653_v8  ;;  %v654_v11 = vadd.f32 1e-05, %v646_v9  ;;  %v647_v12 = vmul.f32 0.03125, %v637_v10 }
 0x360   : > { %v640_v13 = vpop.xlane.xlu1 %639 }
 0x361   : > { %v885_v14 = vpop.eup %884  ;;  %894 = vrsqrt.f32 %v654_v11  ;;  %v655_v16 = vadd.f32 1e-05, %v647_v12  ;;  %v648_v17 = vmul.f32 0.03125, %v640_v13 }
 0x362   : > { %v667_v18 = vmul.f32 %v885_v14, %v1073_v22 }
 0x363   : > { %v887_v19 = vpop.eup %886  ;;  %896 = vrsqrt.f32 %v655_v16  ;;  %v656_v24 = vadd.f32 1e-05, %v648_v17 }
 0x364   : > { %v681_v26 = vmul.f32 %v814_v15, %v667_v18  ;;  %v668_v27 = vmul.f32 %v887_v19, %v1075_v25 }
 0x365   : > { %v889_v20 = vpop.eup %888  ;;  %898 = vrsqrt.f32 %v656_v24 }
 0x366   : > { %v695_v22 = vadd.f32 %v815_v23, %v681_v26  ;;  %v682_v31 = vmul.f32 %v814_v15, %v668_v27  ;;  %v665_v32 = vmul.f32 %v889_v20, %v1079_v30 }
 0x367   : > { %v891_v33 = vpop.eup %890 }
 0x368   : > { %703 = vst.msk [vmem:[%s1126_s30 + $0x10] sm:$0xff] %vm329_vm0, %v695_v22  ;;  %v696_v25 = vadd.f32 %v815_v23, %v682_v31  ;;  %v679_v34 = vmul.f32 %v814_v15, %v665_v32  ;;  %v666_v36 = vmul.f32 %v891_v33, %v1084_v35 }
 0x369   : > { %v893_v37 = vpop.eup %892 }
 0x36a   : > { %704 = vst.msk [vmem:[%s1126_s30 + $0x18] sm:$0xff] %vm329_vm0, %v696_v25  ;;  %v693_v40 = vadd.f32 %v815_v23, %v679_v34  ;;  %v680_v28 = vmul.f32 %v814_v15, %v666_v36  ;;  %v669_v42 = vmul.f32 %v893_v37, %v1089_v41 }
 0x36b   : > { %v895_v43 = vpop.eup %894 }
 0x36c   : > { %701 = vst.msk [vmem:[%s1126_s30] sm:$0xff] %vm329_vm0, %v693_v40  ;;  %v694_v30 = vadd.f32 %v815_v23, %v680_v28  ;;  %v683_v44 = vmul.f32 %v814_v15, %v669_v42  ;;  %v670_v21 = vmul.f32 %v895_v43, %v1094_v45 }
 0x36d   : > { %v897_v46 = vpop.eup %896 }
 0x36e   : > { %702 = vst.msk [vmem:[%s1126_s30 + $0x8] sm:$0xff] %vm329_vm0, %v694_v30  ;;  %v697_v35 = vadd.f32 %v815_v23, %v683_v44  ;;  %v684_v47 = vmul.f32 %v814_v15, %v670_v21  ;;  %v671_v50 = vmul.f32 %v897_v46, %v1099_v29 }
 0x36f   : > { %v899_v51 = vpop.eup %898 }
 0x370   : > { %705 = vst.msk [vmem:[%s1126_s30 + $0x20] sm:$0xff] %vm329_vm0, %v697_v35  ;;  %v698_v41 = vadd.f32 %v815_v23, %v684_v47  ;;  %v685_v38 = vmul.f32 %v814_v15, %v671_v50  ;;  %v672_v52 = vmul.f32 %v899_v51, %v1104_v54 }
 0x372   : > { %706 = vst.msk [vmem:[%s1126_s30 + $0x28] sm:$0xff] %vm329_vm0, %v698_v41  ;;  %v699_v53 = vadd.f32 %v815_v23, %v685_v38  ;;  %v686_v55 = vmul.f32 %v814_v15, %v672_v52 }
 0x374   : > { %707 = vst.msk [vmem:[%s1126_s30 + $0x30] sm:$0xff] %vm329_vm0, %v699_v53  ;;  %v700_v45 = vadd.f32 %v815_v23, %v686_v55 }
 0x376   : > { %708 = vst.msk [vmem:[%s1126_s30 + $0x38] sm:$0xff] %vm329_vm0, %v700_v45 }
 0x377 PF: > { %s17_s26 = sadd.s32 1, %s922_s26   ;;  %s1167_s24 = smov %s918_s25 }
 0x378   : > { %p14_p5 = scmp.ge.s32.totalorder %s17_s26, 4   ;;  %s1168_s25 = smov %s1170_s27 }
 0x37a   :  { %16 = sbr.rel (!%p14_p5) target bundleno = 2 (0x2), region = 78 }

</bundles_post_ra>
